<compile_context>
chip_gen: v7x
topology: tpu7x:2x2x1
jax: 0.10.0
libtpu: 0.0.40
codegen_flags: <defaults>
</compile_context>

<pallas_src>
import functools
import math

import jax
import jax.numpy as jnp
import numpy as np
from jax.experimental import pallas as pl
from jax.experimental.pallas import tpu as pltpu


def _motion_decoder_kernel(num_modes, d, t2,
                           x_ref, ln_ref, w_ref, b_ref,
                           ctx_ref, traj_ref, score_ref):
    """One tile of agents: (TILE_N, D) -> K-broadcast ctx / traj / score rows."""
    x = x_ref[...].astype(jnp.float32)                        # (TN, D)

    # LayerNorm over the hidden dim. mean and E[x^2] are independent reductions.
    mean = jnp.mean(x, axis=-1, keepdims=True)
    mean_sq = jnp.mean(x * x, axis=-1, keepdims=True)
    var = mean_sq - mean * mean
    xn = (x - mean) * jax.lax.rsqrt(var + 1e-5)
    xn = xn * ln_ref[0:1, :] + ln_ref[1:2, :]                 # (TN, D)

    # Single fused GEMM: value-proj -> out-proj -> traj/score-proj folded in
    # the wrapper; weight is pre-transposed so the RHS feeds the MXU directly.
    out = jnp.dot(xn, w_ref[...], preferred_element_type=jnp.float32)
    out = out + b_ref[...]                                    # (TN, D + 2T + 1)

    ctx = out[:, :d]                                          # (TN, D)
    traj = out[:, d:d + t2]                                    # (TN, 2T)
    score = out[:, d + t2:]                                    # (TN, 1)

    # In-register broadcast across the K motion modes; stored lane-dense at the
    # native widths so the wrapper only reshapes (no extra HBM passes).
    ctx_ref[...] = jnp.tile(ctx, (1, num_modes)).astype(ctx_ref.dtype)
    traj_ref[...] = jnp.tile(traj, (1, num_modes)).astype(traj_ref.dtype)
    score_ref[...] = jnp.tile(score, (1, num_modes)).astype(score_ref.dtype)


def motion_decoder_forward(agent_embeddings, params, num_heads, num_time_steps,
                           tile_n=1024, out_dtype=jnp.float32):
    B, A, D = agent_embeddings.shape
    assert D % num_heads == 0
    N = B * A
    K = params["motion_query"].shape[0]
    T2 = 2 * num_time_steps

    x = agent_embeddings.reshape(N, D)

    # ---- Fold the whole post-LayerNorm linear chain into one GEMM. ----------
    # ctx = LN(x) @ (Wo Wv).T + (bv Wo.T + bo)
    # ts  = ctx @ Wts.T + bts = LN(x) @ (Wts Wo Wv).T + (b_ctx Wts.T + bts)
    w_ctx = params["wo"] @ params["wv"]                                   # (D, D)
    b_ctx = params["bv"] @ params["wo"].T + params["bo"]                  # (1, D)
    wts = jnp.concatenate([params["w_traj"], params["w_score"]], axis=0)  # (T2+1, D)
    bts = jnp.concatenate([params["b_traj"], params["b_score"]], axis=1)  # (1, T2+1)
    w_ts = wts @ w_ctx                                                    # (T2+1, D)
    b_ts = b_ctx @ wts.T + bts                                            # (1, T2+1)
    w_all_t = jnp.concatenate([w_ctx, w_ts], axis=0).T                    # (D, D+T2+1)
    b_all = jnp.concatenate([b_ctx, b_ts], axis=1)                        # (1, D+T2+1)
    ln_gb = jnp.concatenate([params["ln_gamma"], params["ln_beta"]], axis=0)  # (2, D)

    # ---- Tile selection. -----------------------------------------------------
    # Large tiles amortize per-grid-step overhead; keep the sublane dim a
    # multiple of 8 (or the full N).  For v7x, pick tile_n so the grid has >=2
    # steps when N is large so the "parallel" axis shards over both TensorCores.
    # (Per-tile VMEM ~ tile_n * 1.9 KB doubled -> well under scoped VMEM; set
    # vmem_limit_bytes explicitly only if tile_n is pushed past ~4096.)
    tile_n = min(tile_n, N)
    if tile_n < N:
        tile_n = max(8, (tile_n // 8) * 8)
    grid = (pl.cdiv(N, tile_n),)

    inputs = (x, ln_gb, w_all_t, b_all)
    in_specs = [
        pl.BlockSpec((tile_n, D), lambda i: (i, 0)),
        pl.BlockSpec(ln_gb.shape, lambda i: (0, 0)),
        pl.BlockSpec(w_all_t.shape, lambda i: (0, 0)),
        pl.BlockSpec(b_all.shape, lambda i: (0, 0)),
    ]
    out_shape = (
        jax.ShapeDtypeStruct((N, K * D), out_dtype),
        jax.ShapeDtypeStruct((N, K * T2), out_dtype),
        jax.ShapeDtypeStruct((N, K), out_dtype),
    )
    out_specs = [
        pl.BlockSpec((tile_n, K * D), lambda i: (i, 0)),
        pl.BlockSpec((tile_n, K * T2), lambda i: (i, 0)),
        pl.BlockSpec((tile_n, K), lambda i: (i, 0)),
    ]

    ctx_flat, traj_flat, score_flat = pl.pallas_call(
        functools.partial(_motion_decoder_kernel, K, D, T2),
        out_shape=out_shape,
        grid_spec=pltpu.PrefetchScalarGridSpec(
            num_scalar_prefetch=0,
            grid=grid,
            in_specs=in_specs,
            out_specs=out_specs,
        ),
        compiler_params=pltpu.CompilerParams(
            dimension_semantics=("parallel",)),
    )(*inputs)

    # All remaining reshapes are layout-free.
    context = ctx_flat.reshape(B, A, K, D)
    trajs = traj_flat.reshape(B, A, K, num_time_steps, 2)
    scores = score_flat.reshape(B, A, K)
    return trajs, scores, context


def motion_decoder_reference(agent_embeddings, params, num_heads, num_time_steps):
    """Pure-JAX reference mirroring the PyTorch forward (eval mode), with the
    full multi-head attention (queries, keys, softmax) spelled out."""
    B, A, D = agent_embeddings.shape
    N = B * A
    mq = params["motion_query"]
    K = mq.shape[0]
    hd = D // num_heads
    x = agent_embeddings.reshape(N, D)
    rep = jnp.broadcast_to(x[:, None, :], (N, K, D))
    mean = jnp.mean(rep, axis=-1, keepdims=True)
    var = jnp.mean((rep - mean) ** 2, axis=-1, keepdims=True)
    kv = (rep - mean) / jnp.sqrt(var + 1e-5) * params["ln_gamma"] + params["ln_beta"]
    qin = jnp.broadcast_to(mq[None], (N, K, D))
    q = qin @ params["wq"].T + params["bq"]
    k = kv @ params["wk"].T + params["bk"]
    v = kv @ params["wv"].T + params["bv"]

    def split(t):
        return t.reshape(N, K, num_heads, hd).transpose(0, 2, 1, 3)

    qh, kh, vh = split(q), split(k), split(v)
    s = jnp.einsum("nhid,nhjd->nhij", qh, kh) / math.sqrt(hd)
    a = jax.nn.softmax(s, axis=-1)
    o = jnp.einsum("nhij,nhjd->nhid", a, vh).transpose(0, 2, 1, 3).reshape(N, K, D)
    ctx = o @ params["wo"].T + params["bo"]
    trajs = ctx @ params["w_traj"].T + params["b_traj"]
    scores = ctx @ params["w_score"].T + params["b_score"]
    return (trajs.reshape(B, A, K, num_time_steps, 2),
            scores.reshape(B, A, K),
            ctx.reshape(B, A, K, D))


def init_params(key, hidden_dim, num_motion_mode, num_time_steps):
    D = hidden_dim
    T2 = 2 * num_time_steps
    ks = jax.random.split(key, 12)
    s = 0.05
    return {
        # motion_query / wq / bq / wk / bk are part of the module but are
        # mathematically dead in its forward (uniform softmax over identical KV).
        "motion_query": jax.random.normal(ks[0], (num_motion_mode, D), jnp.float32),
        "ln_gamma": jnp.ones((1, D), jnp.float32),
        "ln_beta": jnp.zeros((1, D), jnp.float32),
        "wq": jax.random.normal(ks[1], (D, D), jnp.float32) * s,
        "wk": jax.random.normal(ks[2], (D, D), jnp.float32) * s,
        "wv": jax.random.normal(ks[3], (D, D), jnp.float32) * s,
        "bq": jax.random.normal(ks[4], (1, D), jnp.float32) * s,
        "bk": jax.random.normal(ks[5], (1, D), jnp.float32) * s,
        "bv": jax.random.normal(ks[6], (1, D), jnp.float32) * s,
        "wo": jax.random.normal(ks[7], (D, D), jnp.float32) * s,
        "bo": jax.random.normal(ks[8], (1, D), jnp.float32) * s,
        "w_traj": jax.random.normal(ks[9], (T2, D), jnp.float32) * s,
        "b_traj": jax.random.normal(ks[10], (1, T2), jnp.float32) * s,
        "w_score": jax.random.normal(ks[11], (1, D), jnp.float32) * s,
        "b_score": jnp.zeros((1, 1), jnp.float32),
    }


if __name__ == "__main__":
    hidden_dim, num_heads = 32, 4
    num_motion_mode, num_time_steps = 6, 20
    B, A = 2, 8

    key = jax.random.PRNGKey(0)
    kp, kx = jax.random.split(key)
    params = init_params(kp, hidden_dim, num_motion_mode, num_time_steps)
    agent_embeddings = jax.random.normal(kx, (B, A, hidden_dim), jnp.float32)

    # f32 outputs: exact module semantics.
    out = motion_decoder_forward(agent_embeddings, params, num_heads, num_time_steps)
    out = jax.block_until_ready(out)
    trajs, scores, context = out

    ref_trajs, ref_scores, ref_ctx = motion_decoder_reference(
        agent_embeddings, params, num_heads, num_time_steps)
    np.testing.assert_allclose(np.asarray(trajs), np.asarray(ref_trajs), rtol=1e-3, atol=1e-3)
    np.testing.assert_allclose(np.asarray(scores), np.asarray(ref_scores), rtol=1e-3, atol=1e-3)
    np.testing.assert_allclose(np.asarray(context), np.asarray(ref_ctx), rtol=1e-3, atol=1e-3)

    assert trajs.shape == (B, A, num_motion_mode, num_time_steps, 2)
    assert scores.shape == (B, A, num_motion_mode)
    assert context.shape == (B, A, num_motion_mode, hidden_dim)

    # bf16 output storage (the big HBM-write-bandwidth lever on v5e/v6e/v7x);
    # arithmetic stays f32 inside the kernel, so only the store is quantized.
    out_bf16 = motion_decoder_forward(agent_embeddings, params, num_heads,
                                      num_time_steps, out_dtype=jnp.bfloat16)
    out_bf16 = jax.block_until_ready(out_bf16)
    t_b = np.asarray(jnp.asarray(out_bf16[0], jnp.float32))
    s_b = np.asarray(jnp.asarray(out_bf16[1], jnp.float32))
    c_b = np.asarray(jnp.asarray(out_bf16[2], jnp.float32))
    np.testing.assert_allclose(t_b, np.asarray(ref_trajs), rtol=5e-2, atol=5e-2)
    np.testing.assert_allclose(s_b, np.asarray(ref_scores), rtol=5e-2, atol=5e-2)
    np.testing.assert_allclose(c_b, np.asarray(ref_ctx), rtol=5e-2, atol=5e-2)

    print("KERNEL_OK")
</pallas_src>

<mosaic_0001>
module attributes {stable_mosaic.version = 11 : i64} {
  func.func @_motion_decoder_kernel(%arg0: i32, %arg1: memref<16x32xf32, #tpu.memory_space<vmem>>, %arg2: memref<2x32xf32, #tpu.memory_space<vmem>>, %arg3: memref<32x73xf32, #tpu.memory_space<vmem>>, %arg4: memref<1x73xf32, #tpu.memory_space<vmem>>, %arg5: memref<16x192xf32, #tpu.memory_space<vmem>>, %arg6: memref<16x240xf32, #tpu.memory_space<vmem>>, %arg7: memref<16x6xf32, #tpu.memory_space<vmem>>) attributes {dimension_semantics = [#tpu.dimension_semantics<parallel>], iteration_bounds = array<i64: 1>, scalar_prefetch = 0 : i64, scratch_operands = 0 : i64, tpu.core_type = #tpu.core_type<tc>, window_params = [{transform_indices = @transform_0, window_bounds = array<i64: 16, 32>}, {pipeline_mode = #tpu.pipeline_mode<synchronous>, transform_indices = @transform_1, window_bounds = array<i64: 2, 32>}, {pipeline_mode = #tpu.pipeline_mode<synchronous>, transform_indices = @transform_2, window_bounds = array<i64: 32, 73>}, {pipeline_mode = #tpu.pipeline_mode<synchronous>, transform_indices = @transform_3, window_bounds = array<i64: 1, 73>}, {transform_indices = @transform_4, window_bounds = array<i64: 16, 192>}, {transform_indices = @transform_5, window_bounds = array<i64: 16, 240>}, {transform_indices = @transform_6, window_bounds = array<i64: 16, 6>}]} {
    %c0 = arith.constant 0 : index
    %c0_0 = arith.constant 0 : index
    %0 = vector.load %arg1[%c0, %c0_0] : memref<16x32xf32, #tpu.memory_space<vmem>>, vector<16x32xf32>
    %cst = arith.constant dense<0.000000e+00> : vector<16xf32>
    %1 = vector.multi_reduction <add>, %0, %cst [1] : vector<16x32xf32> to vector<16xf32>
    %2 = vector.shape_cast %1 : vector<16xf32> to vector<16x1xf32>
    %cst_1 = arith.constant 3.200000e+01 : f32
    %3 = vector.broadcast %cst_1 : f32 to vector<16x1xf32>
    %4 = arith.divf %2, %3 : vector<16x1xf32>
    %5 = arith.mulf %0, %0 : vector<16x32xf32>
    %cst_2 = arith.constant dense<0.000000e+00> : vector<16xf32>
    %6 = vector.multi_reduction <add>, %5, %cst_2 [1] : vector<16x32xf32> to vector<16xf32>
    %7 = vector.shape_cast %6 : vector<16xf32> to vector<16x1xf32>
    %cst_3 = arith.constant 3.200000e+01 : f32
    %8 = vector.broadcast %cst_3 : f32 to vector<16x1xf32>
    %9 = arith.divf %7, %8 : vector<16x1xf32>
    %10 = arith.mulf %4, %4 : vector<16x1xf32>
    %11 = arith.subf %9, %10 : vector<16x1xf32>
    %12 = vector.broadcast %4 : vector<16x1xf32> to vector<16x32xf32>
    %13 = arith.subf %0, %12 : vector<16x32xf32>
    %cst_4 = arith.constant 9.99999974E-6 : f32
    %14 = vector.broadcast %cst_4 : f32 to vector<16x1xf32>
    %15 = arith.addf %11, %14 : vector<16x1xf32>
    %16 = math.rsqrt %15 : vector<16x1xf32>
    %17 = vector.broadcast %16 : vector<16x1xf32> to vector<16x32xf32>
    %18 = arith.mulf %13, %17 : vector<16x32xf32>
    %c0_5 = arith.constant 0 : index
    %c0_6 = arith.constant 0 : index
    %19 = vector.load %arg2[%c0_5, %c0_6] : memref<2x32xf32, #tpu.memory_space<vmem>>, vector<1x32xf32>
    %20 = vector.broadcast %19 : vector<1x32xf32> to vector<16x32xf32>
    %21 = arith.mulf %18, %20 : vector<16x32xf32>
    %c1 = arith.constant 1 : index
    %c0_7 = arith.constant 0 : index
    %22 = vector.load %arg2[%c1, %c0_7] : memref<2x32xf32, #tpu.memory_space<vmem>>, vector<1x32xf32>
    %23 = vector.broadcast %22 : vector<1x32xf32> to vector<16x32xf32>
    %24 = arith.addf %21, %23 : vector<16x32xf32>
    %c0_8 = arith.constant 0 : index
    %c0_9 = arith.constant 0 : index
    %25 = vector.load %arg3[%c0_8, %c0_9] : memref<32x73xf32, #tpu.memory_space<vmem>>, vector<32x73xf32>
    %cst_10 = arith.constant dense<0.000000e+00> : vector<16x73xf32>
    %26 = tpu.matmul %24, %25, %cst_10 {dimension_numbers = #tpu.dot_dimension_numbers<[1], [0], [0], [1], [0, 0, 1, 1], [], []>} : vector<16x32xf32>, vector<32x73xf32>, vector<16x73xf32> -> vector<16x73xf32>
    %c0_11 = arith.constant 0 : index
    %c0_12 = arith.constant 0 : index
    %27 = vector.load %arg4[%c0_11, %c0_12] : memref<1x73xf32, #tpu.memory_space<vmem>>, vector<1x73xf32>
    %28 = vector.broadcast %27 : vector<1x73xf32> to vector<16x73xf32>
    %29 = arith.addf %26, %28 : vector<16x73xf32>
    %30 = vector.extract_strided_slice %29 {offsets = [0, 0], sizes = [16, 32], strides = [1, 1]} : vector<16x73xf32> to vector<16x32xf32>
    %31 = vector.extract_strided_slice %29 {offsets = [0, 32], sizes = [16, 40], strides = [1, 1]} : vector<16x73xf32> to vector<16x40xf32>
    %32 = vector.extract_strided_slice %29 {offsets = [0, 72], sizes = [16, 1], strides = [1, 1]} : vector<16x73xf32> to vector<16x1xf32>
    %33 = tpu.concatenate %30, %30, %30, %30, %30, %30 in 1 : vector<16x32xf32>, vector<16x32xf32>, vector<16x32xf32>, vector<16x32xf32>, vector<16x32xf32>, vector<16x32xf32> -> vector<16x192xf32>
    %c0_13 = arith.constant 0 : index
    %c0_14 = arith.constant 0 : index
    %34 = vector.load %arg5[%c0_13, %c0_14] : memref<16x192xf32, #tpu.memory_space<vmem>>, vector<16x192xf32>
    tpu.vector_store %arg5[%c0_13, %c0_14], %33 {strides = array<i32>} : memref<16x192xf32, #tpu.memory_space<vmem>>, vector<16x192xf32>,
    %35 = tpu.concatenate %31, %31, %31, %31, %31, %31 in 1 : vector<16x40xf32>, vector<16x40xf32>, vector<16x40xf32>, vector<16x40xf32>, vector<16x40xf32>, vector<16x40xf32> -> vector<16x240xf32>
    %c0_15 = arith.constant 0 : index
    %c0_16 = arith.constant 0 : index
    %36 = vector.load %arg6[%c0_15, %c0_16] : memref<16x240xf32, #tpu.memory_space<vmem>>, vector<16x240xf32>
    tpu.vector_store %arg6[%c0_15, %c0_16], %35 {strides = array<i32>} : memref<16x240xf32, #tpu.memory_space<vmem>>, vector<16x240xf32>,
    %37 = tpu.concatenate %32, %32, %32, %32, %32, %32 in 1 : vector<16x1xf32>, vector<16x1xf32>, vector<16x1xf32>, vector<16x1xf32>, vector<16x1xf32>, vector<16x1xf32> -> vector<16x6xf32>
    %c0_17 = arith.constant 0 : index
    %c0_18 = arith.constant 0 : index
    %38 = vector.load %arg7[%c0_17, %c0_18] : memref<16x6xf32, #tpu.memory_space<vmem>>, vector<16x6xf32>
    tpu.vector_store %arg7[%c0_17, %c0_18], %37 {strides = array<i32>} : memref<16x6xf32, #tpu.memory_space<vmem>>, vector<16x6xf32>,
    return
  }
  func.func @transform_0(%arg0: i32) -> (i32, i32) {
    %c0_i32 = arith.constant 0 : i32
    %c0_i32_0 = arith.constant 0 : i32
    return %arg0, %c0_i32 : i32, i32
  }
  func.func @transform_1(%arg0: i32) -> (i32, i32) {
    %c0_i32 = arith.constant 0 : i32
    %c0_i32_0 = arith.constant 0 : i32
    %c0_i32_1 = arith.constant 0 : i32
    return %c0_i32, %c0_i32_0 : i32, i32
  }
  func.func @transform_2(%arg0: i32) -> (i32, i32) {
    %c0_i32 = arith.constant 0 : i32
    %c0_i32_0 = arith.constant 0 : i32
    %c0_i32_1 = arith.constant 0 : i32
    return %c0_i32, %c0_i32_0 : i32, i32
  }
  func.func @transform_3(%arg0: i32) -> (i32, i32) {
    %c0_i32 = arith.constant 0 : i32
    %c0_i32_0 = arith.constant 0 : i32
    %c0_i32_1 = arith.constant 0 : i32
    return %c0_i32, %c0_i32_0 : i32, i32
  }
  func.func @transform_4(%arg0: i32) -> (i32, i32) {
    %c0_i32 = arith.constant 0 : i32
    %c0_i32_0 = arith.constant 0 : i32
    return %arg0, %c0_i32 : i32, i32
  }
  func.func @transform_5(%arg0: i32) -> (i32, i32) {
    %c0_i32 = arith.constant 0 : i32
    %c0_i32_0 = arith.constant 0 : i32
    return %arg0, %c0_i32 : i32, i32
  }
  func.func @transform_6(%arg0: i32) -> (i32, i32) {
    %c0_i32 = arith.constant 0 : i32
    %c0_i32_0 = arith.constant 0 : i32
    return %arg0, %c0_i32 : i32, i32
  }
}

</mosaic_0001>

<bundles_post_ra>
// kernel: tpu_custom_call.1
= control target key start
LH: loop header
LB: loop body
LE: loop exit
PB: predicated region body
PF: predicated region fallthrough
CT: control target
= control target key end

     0   :  { %12 = vsyncpa [#allocation3], 0  ;;  %s706_s0 = inlined_call_operand.hbm [shape: f32[16,32], index: 0, kind: input, shape index: {}]   ;;  %s707_s1 = inlined_call_operand.vmem [shape: f32[2,32], index: 1, kind: input, shape index: {}]   ;;  %s708_s2 = inlined_call_operand.hbm [shape: f32[32,73], index: 2, kind: input, shape index: {}]   ;;  %s709_s3 = inlined_call_operand.vmem [shape: f32[1,73], index: 3, kind: input, shape index: {}]   ;;  %s710_s4 = inlined_call_operand.hbm [shape: f32[16,192], index: 4, kind: output, shape index: {0}]   ;;  %s711_s5 = inlined_call_operand.hbm [shape: f32[16,240], index: 5, kind: output, shape index: {1}]   ;;  %s712_s6 = inlined_call_operand.vmem [shape: f32[16,6], index: 6, kind: output, shape index: {2}]  }
   0x1   :  { %13 = vsyncpa [#allocation6], 0 }
   0x2   :  { %14 = vsyncpa [#allocation4], 0 }
   0x3   :  { %15 = vsyncpa [#allocation9], 0  ;;  %s507_s21 = smov [#allocation2]   ;;  %s411_s25 = scalar_lea.hbm %s706_s0, 256 }
   0x4   :  { %s21_s22 = sshll.u32 %s507_s21, 4  ;;  %p412_p0 = scmp.ne.s32.totalorder %s706_s0, %s411_s25  ;;  %s22_s22 = int_to_ptr.vmem [resolvable:$true] %s21_s22 }
   0x5   :  { %p415_p1 = scmp.lt.u32.totalorder %s411_s25, %s706_s0 }
   0x7   :  { %p417_p2 = pnand %p415_p1, %p412_p0 }
   0x9   :  { %420 = shalt.err (!%p417_p2)
}
   0xa   :  { %s421_s30 = scalar_lea.vmem %s22_s22, 256  ;;  %p426_p4 = scmp.lt.s32.totalorder %s22_s22, %s22_s22 }
   0xb   :  { %p422_p3 = scmp.ne.s32.totalorder %s22_s22, %s421_s30  ;;  %p427_p5 = scmp.lt.s32.totalorder %s421_s30, %s421_s30 }
   0xd   :  { %p428_p6 = por %p427_p5, %p426_p4 }
   0xf   :  { %p429_p7 = pnand %p428_p6, %p422_p3 }
  0x11   :  { %432 = shalt.err (!%p429_p7)
}
  0x12   :  { %s508_s7 = smov 128   ;;  %s509_s8 = smov 8  }
  0x13   :  { %27 = dma.hbm_to_vmem [thread:$0]  %s706_s0, 256, %s22_s22, [#allocation3], %s508_s7, %s508_s7, %s509_s8  }
  0x14   :  { %s510_s11 = smov [#allocation5]   ;;  %s433_s15 = scalar_lea.hbm %s708_s2, 512 }
  0x15   :  { %s35_s12 = sshll.u32 %s510_s11, 4  ;;  %p434_p8 = scmp.ne.s32.totalorder %s708_s2, %s433_s15  ;;  %s36_s12 = int_to_ptr.vmem [resolvable:$true] %s35_s12 }
  0x16   :  { %p437_p9 = scmp.lt.u32.totalorder %s433_s15, %s708_s2 }
  0x18   :  { %p439_p10 = pnand %p437_p9, %p434_p8 }
  0x1a   :  { %442 = shalt.err (!%p439_p10)
}
  0x1b   :  { %s443_s20 = scalar_lea.vmem %s36_s12, 512  ;;  %p448_p12 = scmp.lt.s32.totalorder %s36_s12, %s36_s12 }
  0x1c   :  { %p444_p11 = scmp.ne.s32.totalorder %s36_s12, %s443_s20  ;;  %p449_p13 = scmp.lt.s32.totalorder %s443_s20, %s443_s20 }
  0x1e   :  { %p450_p0 = por %p449_p13, %p448_p12 }
  0x20   :  { %p451_p1 = pnand %p450_p0, %p444_p11 }
  0x22   :  { %454 = shalt.err (!%p451_p1)
}
  0x23   :  { %41 = dma.hbm_to_vmem [thread:$0]  %s708_s2, 512, %s36_s12, [#allocation6], %s508_s7, %s508_s7, %s509_s8  }
  0x24   :  { %499 = dma.done.wait [#allocation3], 256  }
  0x25   :  { %500 = vsyncadd [#allocation3], 4294967040 }
  0x26   :  { %501 = dma.done.wait [#allocation6], 512  }
  0x27   :  { %502 = vsyncadd [#allocation6], 4294966784  ;;  %vm52_vm0 = vcmask 261120   ;;  %v50_v0 = vld [vmem:[#allocation2] sm:$0xff]  ;;  %v51_v1 = vld [vmem:[#allocation2 + $0x8] sm:$0xff]  ;;  %s512_s27 = smov 57  }
  0x28   :  { %v53_v2 = vsel %vm52_vm0, %v50_v0, 0.0  ;;  %v62_v3 = vmul.f32 %v50_v0, %v50_v0  ;;  %v63_v4 = vmul.f32 %v51_v1, %v51_v1  ;;  %v56_v6 = vsel %vm52_vm0, %v51_v1, 0.0  ;;  %v98_v8 = vld [vmem:[#allocation5] sm:$0xff]  ;;  %v99_v9 = vld [vmem:[#allocation5 + $0x8] sm:$0xff]  ;;  %v100_v10 = vld [vmem:[#allocation5 + $0x10] sm:$0xff]  ;;  %s513_s28 = smov 32  }
  0x29   :  { %54 = vadd.xlane.f32.xlu0 %v53_v2  ;;  %v379_v11 = vpack.c.bf16 %v99_v9, %v98_v8  ;;  %v101_v12 = vld [vmem:[#allocation5 + $0x18] sm:$0xff]  ;;  %v357_v30 = vld [vmem:[%s707_s1] ss:$0 sm:$0xff]  ;;  %v358_v32 = vld [vmem:[%s707_s1 + $0x1] ss:$0 sm:$0xff]  ;;  %s511_s1 = smov 56  }
  0x2a   :  { %v64_v5 = vsel %vm52_vm0, %v62_v3, 0.0  ;;  %v67_v7 = vsel %vm52_vm0, %v63_v4, 0.0  ;;  %v383_v13 = vpack.c.bf16 %v101_v12, %v100_v10  ;;  %v359_v40 = vld [vmem:[%s709_s3] ss:$0 sm:$0xff]  ;;  %s514_s3 = smov 96   ;;  %s515_s29 = smov 58  }
  0x2b   :  { %65 = vadd.xlane.f32.xlu1 %v64_v5  ;;  %380 = vmatprep.subr.bf16.mxu0 %v379_v11  ;;  %s516_s30 = smov 64   ;;  %s517_s7 = smov 48   ;;  %vm212_vm1 = vcmask 523264   ;;  %vm215_vm2 = vcmask 785408   ;;  %vm246_vm3 = vcmask 326656   ;;  %vm249_vm4 = vcmask 654336  }
  0x2c   :  { %382 = vmatpush3.bf16.msra.mxu0 %v379_v11  ;;  %s518_s9 = smov 88   ;;  %s520_s10 = smov 40   ;;  %vm252_vm5 = vcmask 982016  }
  0x2d   :  { %57 = vadd.xlane.f32.xlu0 %v56_v6  ;;  %384 = vmatprep.subr.bf16.mxu0 %v383_v13  ;;  %s521_s11 = smov 60   ;;  %s522_s12 = smov 61  }
  0x2e   :  { %s523_s13 = smov [#allocation7]  }
  0x2f   :  { %68 = vadd.xlane.f32.xlu1 %v67_v7  ;;  %s324_s14 = sshll.u32 %s523_s13, 4  ;;  %s325_s14 = int_to_ptr.vmem [resolvable:$true] %s324_s14 }
  0x30   :  { %386 = vmatpush3.bf16.msra.mxu0 %v383_v13  ;;  %s455_s15 = scalar_lea.vmem %s325_s14, 512  ;;  %p460_p3 = scmp.lt.s32.totalorder %s325_s14, %s325_s14 }
  0x31   :  { %p456_p2 = scmp.ne.s32.totalorder %s325_s14, %s455_s15  ;;  %p461_p4 = scmp.lt.s32.totalorder %s455_s15, %s455_s15 }
  0x33   :  { %p462_p5 = por %p461_p4, %p460_p3 }
  0x35   :  { %p463_p6 = pnand %p462_p5, %p456_p2 }
  0xb6   :  { %v55_v14 = vpop.xlane.xlu0 %54 }
  0xb7   :  { %v60_v15 = vmul.f32 0.03125, %v55_v14 }
  0xb8   :  { %v66_v16 = vpop.xlane.xlu1 %65 }
  0xb9   :  { %v72_v17 = vmul.f32 %v60_v15, %v60_v15  ;;  %v70_v18 = vmul.f32 0.03125, %v66_v16  ;;  %v76_v28 = vsub.f32 %v50_v0, %v60_v15 }
  0xba   :  { %v58_v19 = vpop.xlane.xlu0 %57 }
  0xbb   :  { %v74_v20 = vsub.f32 %v70_v18, %v72_v17  ;;  %v61_v21 = vmul.f32 0.03125, %v58_v19 }
  0xbc   :  { %v69_v22 = vpop.xlane.xlu1 %68 }
  0xbd   :  { %v78_v23 = vadd.f32 1e-05, %v74_v20  ;;  %v73_v24 = vmul.f32 %v61_v21, %v61_v21  ;;  %v71_v25 = vmul.f32 0.03125, %v69_v22  ;;  %v77_v33 = vsub.f32 %v51_v1, %v61_v21 }
  0xbf   :  { %407 = vrsqrt.f32 %v78_v23  ;;  %v75_v26 = vsub.f32 %v71_v25, %v73_v24 }
  0xc1   :  { %v79_v27 = vadd.f32 1e-05, %v75_v26 }
  0xc3   :  { %409 = vrsqrt.f32 %v79_v27 }
  0xc9   :  { %v408_v29 = vpop.eup %407 }
  0xca   :  { %v82_v31 = vmul.f32 %v408_v29, %v76_v28 }
  0xcc   :  { %v89_v34 = vmul.f32 %v357_v30, %v82_v31 }
  0xcd   :  { %v410_v35 = vpop.eup %409 }
  0xce   :  { %v83_v36 = vmul.f32 %v410_v35, %v77_v33  ;;  %v96_v37 = vadd.f32 %v358_v32, %v89_v34 }
  0xd0   :  { %v90_v38 = vmul.f32 %v357_v30, %v83_v36  ;;  %376 = vmatprep.mubr.msk.f32.mxu0 %vm52_vm0, %v96_v37 }
  0xd2   :  { %v97_v39 = vadd.f32 %v358_v32, %v90_v38 }
  0xd4   :  { %377 = vmatmul.mubr.msk.f32.vlgmr.msra.gmra.mrb[0].mxu0 %vm52_vm0, %v97_v39 }
 0x1a7   :  { %v378_v41 = vpop.f32.mrb[0].mxu0 }
 0x1a8   :  { %v603_v42 = vadd.f32 %v378_v41, %v359_v40  ;;  %v181_v43 = vpop.f32.mrb[1].mxu0 }
 0x1a9   :  { %v605_v44 = vadd.f32 %v359_v40, %v181_v43 }
 0x1aa   :  { %267 = vrot.lane.b32.xlu1 %v603_v42, %s511_s1 }
 0x1ab   :  { %265 = vrot.lane.b32.xlu0 %v605_v44, %s511_s1 }
 0x1ae   :  { %273 = vrot.lane.b32.xlu1 %v603_v42, %s512_s27 }
 0x1af   :  { %192 = vrot.lane.b32.xlu0 %v605_v44, %s513_s28 }
 0x1b2   :  { %194 = vrot.lane.b32.xlu1 %v603_v42, %s513_s28 }
 0x1b3   :  { %204 = vrot.lane.b32.xlu0 %v605_v44, %s514_s3 }
 0x1b6   :  { %206 = vrot.lane.b32.xlu1 %v603_v42, %s514_s3 }
 0x1b7   :  { %222 = vrot.lane.b32.xlu0 %v605_v44, %s509_s8 }
 0x1ba   :  { %224 = vrot.lane.b32.xlu1 %v603_v42, %s509_s8  ;;  %s519_s8 = smov 59  }
 0x1bb   :  { %277 = vrot.lane.b32.xlu0 %v605_v44, %s515_s29 }
 0x1be   :  { %279 = vrot.lane.b32.xlu1 %v603_v42, %s515_s29 }
 0x1bf   :  { %198 = vrot.lane.b32.xlu0 %v605_v44, %s516_s30 }
 0x1c2   :  { %200 = vrot.lane.b32.xlu1 %v603_v42, %s516_s30 }
 0x1c3   :  { %228 = vrot.lane.b32.xlu0 %v605_v44, %s517_s7 }
 0x1c6   :  { %230 = vrot.lane.b32.xlu1 %v603_v42, %s517_s7 }
 0x1c7   :  { %234 = vrot.lane.b32.xlu0 %v605_v44, %s518_s9 }
 0x1ca   :  { %236 = vrot.lane.b32.xlu1 %v603_v42, %s518_s9 }
 0x1cb   :  { %283 = vrot.lane.b32.xlu0 %v605_v44, %s519_s8 }
 0x1ce   :  { %285 = vrot.lane.b32.xlu1 %v603_v42, %s519_s8 }
 0x1cf   :  { %240 = vrot.lane.b32.xlu0 %v605_v44, %s520_s10 }
 0x1d2   :  { %242 = vrot.lane.b32.xlu1 %v603_v42, %s520_s10 }
 0x1d3   :  { %289 = vrot.lane.b32.xlu0 %v605_v44, %s521_s11 }
 0x1d6   :  { %291 = vrot.lane.b32.xlu1 %v603_v42, %s521_s11 }
 0x1d7   :  { %295 = vrot.lane.b32.xlu0 %v605_v44, %s522_s12 }
 0x1da   :  { %271 = vrot.lane.b32.xlu1 %v605_v44, %s512_s27 }
 0x1de   :  { %297 = vrot.lane.b32.xlu1 %v603_v42, %s522_s12 }
 0x21c   :  { %v637_v45 = vpop.permute.xlu1 %267 }
 0x21d   :  { %v639_v46 = vpop.permute.xlu0 %265 }
 0x220   :  { %v641_v47 = vpop.permute.xlu1 %273 }
 0x221   :  { %v193_v48 = vpop.permute.xlu0 %192 }
 0x222   :  { %v210_v49 = vsel %vm52_vm0, %v605_v44, %v193_v48 }
 0x223   :  { %219 = vst.msk [vmem:[#allocation7 + $0x8] sm:$0xff] %vm212_vm1, %v210_v49 }
 0x224   :  { %v195_v50 = vpop.permute.xlu1 %194 }
 0x225   :  { %v211_v51 = vsel %vm52_vm0, %v603_v42, %v195_v50  ;;  %v205_v52 = vpop.permute.xlu0 %204 }
 0x226   :  { %221 = vst.msk [vmem:[#allocation7 + $0x18] sm:$0xff] %vm212_vm1, %v211_v51 }
 0x228   :  { %v207_v53 = vpop.permute.xlu1 %206 }
 0x229   :  { %v223_v54 = vpop.permute.xlu0 %222 }
 0x22a   :  { %v247_v1 = vsel %vm246_vm3, %v205_v52, %v223_v54 }
 0x22c   :  { %v225_v55 = vpop.permute.xlu1 %224 }
 0x22d   :  { %v649_v56 = vpop.permute.xlu0 %277 }
 0x230   :  { %v651_v57 = vpop.permute.xlu1 %279 }
 0x231   :  { %v199_v58 = vpop.permute.xlu0 %198 }
 0x232   :  { %v213_v59 = vsel %vm212_vm1, %v210_v49, %v199_v58 }
 0x233   :  { %v216_v60 = vsel %vm215_vm2, %v213_v59, %v205_v52 }
 0x234   :  { %218 = vst [vmem:[#allocation7] sm:$0xff] %v216_v60  ;;  %v201_v61 = vpop.permute.xlu1 %200 }
 0x235   :  { %v214_v62 = vsel %vm212_vm1, %v211_v51, %v201_v61  ;;  %v229_v63 = vpop.permute.xlu0 %228 }
 0x236   :  { %v217_v0 = vsel %vm215_vm2, %v214_v62, %v207_v53 }
 0x237   :  { %220 = vst [vmem:[#allocation7 + $0x10] sm:$0xff] %v217_v0 }
 0x238   :  { %v231_v2 = vpop.permute.xlu1 %230 }
 0x239   :  { %466 = shalt.err (!%p463_p6)
}
 0x23a   :  { %s467_s18 = scalar_lea.hbm %s710_s4, 512 }
 0x23b   :  { %p468_p7 = scmp.ne.s32.totalorder %s710_s4, %s467_s18  ;;  %p471_p8 = scmp.lt.u32.totalorder %s467_s18, %s710_s4 }
 0x23d   :  { %p473_p9 = pnand %p471_p8, %p468_p7 }
 0x23f   :  { %476 = shalt.err (!%p473_p9)
}
 0x240   :  { %s524_s2 = smov 256   ;;  %s525_s22 = smov 16   ;;  %v250_v3 = vsel %vm249_vm4, %v247_v1, %v229_v63  ;;  %v235_v4 = vpop.permute.xlu0 %234  ;;  %v248_v6 = vsel %vm246_vm3, %v207_v53, %v225_v55  ;;  %v237_v8 = vpop.permute.xlu1 %236  ;;  %vm257_vm6 = vcmask 588800   ;;  %vm261_vm7 = vcmask 916480  }
 0x241   :  { %330 = dma.vmem_to_hbm [thread:$0]  %s325_s14, 512, %s710_s4, [#allocation4], %s524_s2, %s524_s2, %s525_s22   ;;  %v253_v5 = vsel %vm252_vm5, %v250_v3, %v235_v4  ;;  %v251_v7 = vsel %vm249_vm4, %v248_v6, %v231_v2  ;;  %v255_v12 = vsel %vm52_vm0, %v235_v4, %v605_v44  ;;  %v256_v15 = vsel %vm52_vm0, %v237_v8, %v603_v42 }
 0x242   :  { %260 = vst [vmem:[#allocation8] sm:$0xff] %v253_v5  ;;  %v254_v9 = vsel %vm252_vm5, %v251_v7, %v237_v8  ;;  %s526_s4 = smov [#allocation8]  }
 0x243   :  { %263 = vst [vmem:[#allocation8 + $0x10] sm:$0xff] %v254_v9  ;;  %s336_s25 = sshll.u32 %s526_s4, 4  ;;  %s337_s25 = int_to_ptr.vmem [resolvable:$true] %s336_s25 }
 0x244   :  { %v284_v10 = vpop.permute.xlu0 %283  ;;  %v286_v11 = vpop.permute.xlu1 %285  ;;  %s477_s26 = scalar_lea.vmem %s337_s25, 512  ;;  %p482_p11 = scmp.lt.s32.totalorder %s337_s25, %s337_s25 }
 0x245   :  { %p478_p10 = scmp.ne.s32.totalorder %s337_s25, %s477_s26  ;;  %p483_p12 = scmp.lt.s32.totalorder %s477_s26, %s477_s26 }
 0x247   :  { %p484_p13 = por %p483_p12, %p482_p11 }
 0x248   :  { %v241_v13 = vpop.permute.xlu0 %240  ;;  %v243_v16 = vpop.permute.xlu1 %242 }
 0x249   :  { %v258_v14 = vsel %vm257_vm6, %v255_v12, %v241_v13  ;;  %v259_v17 = vsel %vm257_vm6, %v256_v15, %v243_v16  ;;  %p485_p0 = pnand %p484_p13, %p478_p10 }
 0x24a   :  { %262 = vst.msk [vmem:[#allocation8 + $0x8] sm:$0xff] %vm261_vm7, %v258_v14  ;;  %264 = vst.msk [vmem:[#allocation8 + $0x18] sm:$0xff] %vm261_vm7, %v259_v17 }
 0x24b   :  { %488 = shalt.err (!%p485_p0)
}
 0x24c   :  { %s489_s28 = scalar_lea.hbm %s711_s5, 512 }
 0x24d   :  { %p490_p1 = scmp.ne.s32.totalorder %s711_s5, %s489_s28  ;;  %p493_p2 = scmp.lt.u32.totalorder %s489_s28, %s711_s5 }
 0x24f   :  { %p495_p3 = pnand %p493_p2, %p490_p1 }
 0x251   :  { %498 = shalt.err (!%p495_p3)
}
 0x252   :  { %342 = dma.vmem_to_hbm [thread:$0]  %s337_s25, 512, %s711_s5, [#allocation9], %s524_s2, %s524_s2, %s525_s22   ;;  %v292_v18 = vpop.permute.xlu1 %291  ;;  %vm301_vm8 = vcmask 7168   ;;  %v290_v19 = vpop.permute.xlu0 %289  ;;  %vm304_vm9 = vcmask 15360   ;;  %vm307_vm10 = vcmask 23552   ;;  %vm310_vm11 = vcmask 31744  }
 0x253   :  { %v303_v21 = vsel %vm301_vm8, %v637_v45, %v641_v47  ;;  %vm313_vm12 = vcmask 39936   ;;  %vm316_vm13 = vcmask 48128  }
 0x254   :  { %v306_v23 = vsel %vm304_vm9, %v303_v21, %v651_v57 }
 0x255   :  { %v309_v25 = vsel %vm307_vm10, %v306_v23, %v286_v11 }
 0x256   :  { %v272_v20 = vpop.permute.xlu1 %271  ;;  %v312_v27 = vsel %vm310_vm11, %v309_v25, %v292_v18  ;;  %v296_v28 = vpop.permute.xlu0 %295 }
 0x257   :  { %v302_v22 = vsel %vm301_vm8, %v639_v46, %v272_v20 }
 0x258   :  { %v305_v24 = vsel %vm304_vm9, %v302_v22, %v649_v56 }
 0x259   :  { %v308_v26 = vsel %vm307_vm10, %v305_v24, %v284_v10 }
 0x25a   :  { %v298_v29 = vpop.permute.xlu1 %297  ;;  %v311_v30 = vsel %vm310_vm11, %v308_v26, %v290_v19 }
 0x25b   :  { %v314_v31 = vsel %vm313_vm12, %v311_v30, %v296_v28  ;;  %v315_v32 = vsel %vm313_vm12, %v312_v27, %v298_v29 }
 0x25c   :  { %317 = vst.msk [vmem:[%s712_s6] sm:$0xff] %vm316_vm13, %v314_v31  ;;  %318 = vst.msk [vmem:[%s712_s6 + $0x8] sm:$0xff] %vm316_vm13, %v315_v32 }
 0x25d   :  { %503 = dma.done.wait [#allocation4], 512  }
 0x25e   :  { %504 = vsyncadd [#allocation4], 4294966784 }
 0x25f   :  { %505 = dma.done.wait [#allocation9], 512  }
 0x260   :  { %506 = vsyncadd [#allocation9], 4294966784 }
 0x261   :  { %353 = vsyncpa [#allocation3], 1 }
 0x262   :  { %354 = vsyncpa [#allocation6], 1 }
 0x263   :  { %355 = vsyncpa [#allocation4], 1 }
 0x264   :  { %356 = vsyncpa [#allocation9], 1 }

</bundles_post_ra>
